<compile_context>
chip_gen: v5e
topology: v5e:2x2
jax: 0.10.0
libtpu: 0.0.40
codegen_flags: <defaults>
</compile_context>

<pallas_src>
import functools

import jax
import jax.numpy as jnp
from jax.experimental import pallas as pl
from jax.experimental.pallas import tpu as pltpu


# ----------------------------- small helpers -------------------------------

def _round_up(x, m):
    return (x + m - 1) // m * m


def _pick_tile(padded_dim, target):
    """Largest multiple-of-128 divisor of padded_dim that is <= target."""
    n = padded_dim // 128
    t = max(target // 128, 1)
    for d in range(min(n, t), 0, -1):
        if n % d == 0:
            return d * 128
    return 128


def _vmem_budget_bytes():
    """Generation-aware VMEM budget (leave headroom for compiler scratch)."""
    try:
        capacity = int(pltpu.get_tpu_info().vmem_capacity_bytes)
    except Exception:  # pragma: no cover - conservative fallback (v7x-sized)
        capacity = 64 << 20
    budget = min(int(capacity * 0.8), capacity - (16 << 20))
    return max(budget, 16 << 20)


def _choose_tiles(tb, k_pad, n_pad, itemsize, budget):
    """Budget-driven (TK, TN): double-buffered blocks + f32 acc must fit."""
    target = 2048 if budget > (64 << 20) else 1024   # bigger tiles on 128MiB parts
    tk = _pick_tile(k_pad, target)
    tn = _pick_tile(n_pad, target)

    def need(a, b):
        # 2x (double buffer) for x/w/bias/out blocks + f32 accumulator + margin
        return (2 * (tb * a + a * b + b + tb * b) * itemsize
                + tb * b * 4 + (2 << 20))

    while need(tk, tn) > budget and (tk > 128 or tn > 128):
        if tk >= tn and tk > 128:
            tk = _pick_tile(k_pad, tk // 2)
        else:
            tn = _pick_tile(n_pad, tn // 2)
    return tk, tn, need(tk, tn)


def _choose_batch(batch, max_tb=256):
    """Full-B block for small batches; 8-aligned batch tiles for large ones."""
    if batch <= max_tb:
        return batch, batch          # (padded batch, TB) -> single batch tile
    tb = max_tb                      # multiple of 8
    return _round_up(batch, tb), tb


# ------------------------------- kernel ------------------------------------

def _linear_kernel(x_ref, w_ref, b_ref, o_ref, acc_ref, *, apply_relu):
    """Tiled  out = act(x @ w + b).  Grid = (batch, N, K); K is the reduction."""
    k = pl.program_id(2)

    @pl.when(k == 0)
    def _():
        # Fold the bias into the accumulator init (single broadcast per tile).
        acc_ref[...] = jnp.broadcast_to(
            b_ref[...].astype(jnp.float32), acc_ref.shape)

    # Cast the activation tile to the weight dtype so bf16 weights take the
    # bf16 MXU path (no-op for f32 weights); accumulate in f32.
    acc_ref[...] += jnp.dot(x_ref[...].astype(w_ref.dtype), w_ref[...],
                            preferred_element_type=jnp.float32)

    @pl.when(k == pl.num_programs(2) - 1)
    def _():
        r = acc_ref[...]
        if apply_relu:
            r = jnp.maximum(r, 0.0)
        o_ref[...] = r.astype(o_ref.dtype)


def _pallas_linear(x, w, b, *, tb, apply_relu, out_dtype):
    """x: (Bp, Kp), w: (Kp, Np), b: (1, Np); Kp/Np multiples of 128, Bp % tb == 0."""
    b_pad, k_pad = x.shape
    k_pad_w, n_pad = w.shape
    assert k_pad == k_pad_w and b.shape == (1, n_pad)
    assert b_pad % tb == 0
    n_b = b_pad // tb

    itemsize = max(jnp.dtype(x.dtype).itemsize, jnp.dtype(w.dtype).itemsize)
    budget = _vmem_budget_bytes()
    tk, tn, need = _choose_tiles(tb, k_pad, n_pad, itemsize, budget)
    n_k = k_pad // tk
    n_n = n_pad // tn
    vmem_limit = int(min(budget, max(need + (4 << 20), 16 << 20)))

    cost = pl.CostEstimate(
        flops=2 * b_pad * k_pad * n_pad,
        transcendentals=0,
        bytes_accessed=int(
            x.size * jnp.dtype(x.dtype).itemsize
            + (w.size + b.size) * jnp.dtype(w.dtype).itemsize
            + b_pad * n_pad * jnp.dtype(out_dtype).itemsize),
    )

    kernel = functools.partial(_linear_kernel, apply_relu=apply_relu)

    return pl.pallas_call(
        kernel,
        out_shape=jax.ShapeDtypeStruct((b_pad, n_pad), out_dtype),
        grid_spec=pltpu.PrefetchScalarGridSpec(
            num_scalar_prefetch=0,
            grid=(n_b, n_n, n_k),                       # K (reduction) innermost
            in_specs=[
                pl.BlockSpec((tb, tk), lambda bi, j, k: (bi, k)),   # x
                pl.BlockSpec((tk, tn), lambda bi, j, k: (k, j)),    # w
                pl.BlockSpec((1, tn),  lambda bi, j, k: (0, j)),    # bias
            ],
            out_specs=pl.BlockSpec((tb, tn), lambda bi, j, k: (bi, j)),
            scratch_shapes=[pltpu.VMEM((tb, tn), jnp.float32)],     # f32 accumulator
        ),
        compiler_params=pltpu.CompilerParams(
            dimension_semantics=("parallel", "parallel", "arbitrary"),
            vmem_limit_bytes=vmem_limit,
        ),
        cost_estimate=cost,
    )(x, w, b)


# --------------------------- module-level wrapper ---------------------------

def prepare_hypernetwork_params(w1, b1, w2, b2):
    """Pad parameters to 128-lane multiples ONCE (hoisted out of the forward).

    w1: (input_size, hidden)   b1: (hidden,)
    w2: (hidden, output_size)  b2: (output_size,)
    Weights may be bf16 (halves HBM weight traffic); accumulation stays f32.
    """
    d_in, hidden = w1.shape
    hidden2, d_out = w2.shape
    assert hidden2 == hidden and b1.shape == (hidden,) and b2.shape == (d_out,)

    k_pad = _round_up(d_in, 128)
    h_pad = _round_up(hidden, 128)
    n_pad = _round_up(d_out, 128)

    w1p = w1 if (k_pad == d_in and h_pad == hidden) else jnp.pad(
        w1, ((0, k_pad - d_in), (0, h_pad - hidden)))
    b1p = b1.reshape(1, hidden)
    if h_pad != hidden:
        b1p = jnp.pad(b1p, ((0, 0), (0, h_pad - hidden)))
    w2p = w2 if (h_pad == hidden and n_pad == d_out) else jnp.pad(
        w2, ((0, h_pad - hidden), (0, n_pad - d_out)))
    b2p = b2.reshape(1, d_out)
    if n_pad != d_out:
        b2p = jnp.pad(b2p, ((0, 0), (0, n_pad - d_out)))

    return {"w1": w1p, "b1": b1p, "w2": w2p, "b2": b2p,
            "d_in": d_in, "hidden": hidden, "d_out": d_out}


def naive_hypernetwork_forward(x, params, target_shape=None):
    """Pallas implementation of NaiveHyperNetwork.forward.

    x: (B, ...) flattened row-major to (B, input_size) — matches
       x.contiguous().view(B, -1) for NCHW inputs.
    """
    batch = x.shape[0]
    x_flat = x.reshape(batch, -1)
    d_in, d_out = params["d_in"], params["d_out"]
    assert x_flat.shape[1] == d_in

    k_pad = params["w1"].shape[0]
    if k_pad != d_in:                      # no-op when d_in % 128 == 0
        x_flat = jnp.pad(x_flat, ((0, 0), (0, k_pad - d_in)))

    b_pad, tb = _choose_batch(batch)
    if b_pad != batch:
        x_flat = jnp.pad(x_flat, ((0, b_pad - batch), (0, 0)))

    # fc1 + ReLU: x/w1 are streamed exactly once (no per-output-tile recompute).
    h = _pallas_linear(x_flat, params["w1"], params["b1"],
                       tb=tb, apply_relu=True, out_dtype=jnp.float32)
    # fc2: w2 streamed once; h is tiny and stays hot.
    out_p = _pallas_linear(h, params["w2"], params["b2"],
                           tb=tb, apply_relu=False, out_dtype=x.dtype)

    out = out_p[:batch, :d_out]            # drop padded rows / lanes
    if target_shape is not None:
        out = out.reshape(target_shape)    # x.view(self.target_shape)
    return out


def init_linear_params(key, fan_in, fan_out, dtype=jnp.float32):
    # Matches torch.nn.Linear default: U(-1/sqrt(fan_in), 1/sqrt(fan_in)).
    kw, kb = jax.random.split(key)
    bound = 1.0 / jnp.sqrt(fan_in)
    w = jax.random.uniform(kw, (fan_in, fan_out), dtype, -bound, bound)
    b = jax.random.uniform(kb, (fan_out,), dtype, -bound, bound)
    return w, b


if __name__ == "__main__":
    key = jax.random.PRNGKey(0)
    k_x, k_fc1, k_fc2 = jax.random.split(key, 3)

    # Small shapes consistent with the module's forward:
    B, C, H, W = 2, 4, 16, 16
    input_size = C * H * W          # 1024
    hidden_size = 32
    output_size = 64
    target_shape = None             # no target_layer passed (target_shape stays None)

    x = jax.random.normal(k_x, (B, C, H, W), jnp.float32)
    w1, b1 = init_linear_params(k_fc1, input_size, hidden_size)
    w2, b2 = init_linear_params(k_fc2, hidden_size, output_size)

    # Pad weights once, outside the forward (hoisted per perf feedback).
    params = prepare_hypernetwork_params(w1, b1, w2, b2)

    out = naive_hypernetwork_forward(x, params, target_shape)
    out = jax.block_until_ready(out)

    # Pure-JAX reference check.
    x_flat = x.reshape(B, -1)
    ref = jnp.maximum(x_flat @ w1 + b1, 0.0) @ w2 + b2
    assert out.shape == (B, output_size)
    assert jnp.allclose(out, ref, atol=1e-4, rtol=1e-5), "mismatch vs reference"

    print("KERNEL_OK")
</pallas_src>

<mosaic_0001>
module attributes {stable_mosaic.version = 11 : i64} {
  func.func @_linear_kernel(%arg0: i32, %arg1: i32, %arg2: i32, %arg3: memref<2x1024xf32, #tpu.memory_space<vmem>>, %arg4: memref<1024x128xf32, #tpu.memory_space<vmem>>, %arg5: memref<1x128xf32, #tpu.memory_space<vmem>>, %arg6: memref<2x128xf32, #tpu.memory_space<vmem>>, %arg7: memref<2x128xf32, #tpu.memory_space<vmem>>) attributes {dimension_semantics = [#tpu.dimension_semantics<parallel>, #tpu.dimension_semantics<parallel>, #tpu.dimension_semantics<arbitrary>], iteration_bounds = array<i64: 1, 1, 1>, scalar_prefetch = 0 : i64, scratch_operands = 1 : i64, tpu.core_type = #tpu.core_type<tc>, window_params = [{transform_indices = @transform_0, window_bounds = array<i64: 2, 1024>}, {transform_indices = @transform_1, window_bounds = array<i64: 1024, 128>}, {transform_indices = @transform_2, window_bounds = array<i64: 1, 128>}, {transform_indices = @transform_3, window_bounds = array<i64: 2, 128>}]} {
    %c0_i32 = arith.constant 0 : i32
    %0 = arith.cmpi eq, %arg2, %c0_i32 : i32
    %1 = arith.extui %0 : i1 to i32
    %c0_i32_0 = arith.constant 0 : i32
    %2 = arith.cmpi ne, %1, %c0_i32_0 : i32
    scf.if %2 {
      %c0_10 = arith.constant 0 : index
      %c0_11 = arith.constant 0 : index
      %12 = vector.load %arg5[%c0_10, %c0_11] : memref<1x128xf32, #tpu.memory_space<vmem>>, vector<1x128xf32>
      %13 = vector.shape_cast %12 : vector<1x128xf32> to vector<1x128xf32>
      %14 = vector.broadcast %13 : vector<1x128xf32> to vector<2x128xf32>
      %c0_12 = arith.constant 0 : index
      %c0_13 = arith.constant 0 : index
      %15 = vector.load %arg7[%c0_12, %c0_13] : memref<2x128xf32, #tpu.memory_space<vmem>>, vector<2x128xf32>
      tpu.vector_store %arg7[%c0_12, %c0_13], %14 {strides = array<i32>} : memref<2x128xf32, #tpu.memory_space<vmem>>, vector<2x128xf32>,
    } else {
    }
    %c0 = arith.constant 0 : index
    %c0_1 = arith.constant 0 : index
    %3 = vector.load %arg7[%c0, %c0_1] : memref<2x128xf32, #tpu.memory_space<vmem>>, vector<2x128xf32>
    %c0_2 = arith.constant 0 : index
    %c0_3 = arith.constant 0 : index
    %4 = vector.load %arg3[%c0_2, %c0_3] : memref<2x1024xf32, #tpu.memory_space<vmem>>, vector<2x1024xf32>
    %c0_4 = arith.constant 0 : index
    %c0_5 = arith.constant 0 : index
    %5 = vector.load %arg4[%c0_4, %c0_5] : memref<1024x128xf32, #tpu.memory_space<vmem>>, vector<1024x128xf32>
    %cst = arith.constant dense<0.000000e+00> : vector<2x128xf32>
    %6 = tpu.matmul %4, %5, %cst {dimension_numbers = #tpu.dot_dimension_numbers<[1], [0], [0], [1], [0, 0, 1, 1], [], []>} : vector<2x1024xf32>, vector<1024x128xf32>, vector<2x128xf32> -> vector<2x128xf32>
    %7 = arith.addf %3, %6 : vector<2x128xf32>
    %c0_6 = arith.constant 0 : index
    %c0_7 = arith.constant 0 : index
    %8 = vector.load %arg7[%c0_6, %c0_7] : memref<2x128xf32, #tpu.memory_space<vmem>>, vector<2x128xf32>
    tpu.vector_store %arg7[%c0_6, %c0_7], %7 {strides = array<i32>} : memref<2x128xf32, #tpu.memory_space<vmem>>, vector<2x128xf32>,
    %c0_i32_8 = arith.constant 0 : i32
    %9 = arith.cmpi eq, %arg2, %c0_i32_8 : i32
    %10 = arith.extui %9 : i1 to i32
    %c0_i32_9 = arith.constant 0 : i32
    %11 = arith.cmpi ne, %10, %c0_i32_9 : i32
    scf.if %11 {
      %c0_10 = arith.constant 0 : index
      %c0_11 = arith.constant 0 : index
      %12 = vector.load %arg7[%c0_10, %c0_11] : memref<2x128xf32, #tpu.memory_space<vmem>>, vector<2x128xf32>
      %cst_12 = arith.constant 0.000000e+00 : f32
      %13 = vector.broadcast %cst_12 : f32 to vector<2x128xf32>
      %14 = arith.maximumf %12, %13 : vector<2x128xf32>
      %c0_13 = arith.constant 0 : index
      %c0_14 = arith.constant 0 : index
      %15 = vector.load %arg6[%c0_13, %c0_14] : memref<2x128xf32, #tpu.memory_space<vmem>>, vector<2x128xf32>
      tpu.vector_store %arg6[%c0_13, %c0_14], %14 {strides = array<i32>} : memref<2x128xf32, #tpu.memory_space<vmem>>, vector<2x128xf32>,
    } else {
    }
    return
  }
  func.func @transform_0(%arg0: i32, %arg1: i32, %arg2: i32) -> (i32, i32) {
    %c0_i32 = arith.constant 0 : i32
    return %arg0, %arg2 : i32, i32
  }
  func.func @transform_1(%arg0: i32, %arg1: i32, %arg2: i32) -> (i32, i32) {
    %c0_i32 = arith.constant 0 : i32
    return %arg2, %arg1 : i32, i32
  }
  func.func @transform_2(%arg0: i32, %arg1: i32, %arg2: i32) -> (i32, i32) {
    %c0_i32 = arith.constant 0 : i32
    %c0_i32_0 = arith.constant 0 : i32
    return %c0_i32, %arg1 : i32, i32
  }
  func.func @transform_3(%arg0: i32, %arg1: i32, %arg2: i32) -> (i32, i32) {
    %c0_i32 = arith.constant 0 : i32
    return %arg0, %arg1 : i32, i32
  }
}

</mosaic_0001>

<bundles_post_ra>
// kernel: tpu_custom_call.1
= control target key start
LH: loop header
LB: loop body
LE: loop exit
PB: predicated region body
PF: predicated region fallthrough
CT: control target
= control target key end

     0   :  { %8 = vsyncpa [#allocation4], 0  ;;  %s513_s0 = inlined_call_operand.hbm [shape: f32[2,1024], index: 0, kind: input, shape index: {}]   ;;  %s514_s1 = inlined_call_operand.hbm [shape: f32[1024,128], index: 1, kind: input, shape index: {}]   ;;  %s515_s2 = inlined_call_operand.vmem [shape: f32[1,128], index: 2, kind: input, shape index: {}]   ;;  %s516_s3 = inlined_call_operand.hbm [shape: f32[2,128], index: 3, kind: output, shape index: {}]  }
   0x1   :  { %9 = vsyncpa [#allocation7], 0 }
   0x2   :  { %10 = vsyncpa [#allocation5], 0  ;;  %s16_s14 = sshll.u32 %s513_s0, 4  ;;  %s476_s15 = smov [#allocation3]   ;;  %s17_s14 = int_to_ptr.hbm [resolvable:$true] %s16_s14 }
   0x3   :  { %s18_s16 = sshll.u32 %s476_s15, 4  ;;  %s26_s19 = sshll.u32 %s514_s1, 4  ;;  %s19_s16 = int_to_ptr.vmem [resolvable:$true] %s18_s16  ;;  %s27_s19 = int_to_ptr.hbm [resolvable:$true] %s26_s19 }
   0x4   :  { %21 = dma.hbm_to_vmem [thread:$0]  %s17_s14, 256, %s19_s16, [#allocation4]  }
   0x5   :  { %s477_s20 = smov [#allocation6]   ;;  %s478_s22 = smov 128  }
   0x6   :  { %s28_s21 = sshll.u32 %s477_s20, 4  ;;  %s479_s23 = smov 8   ;;  %s29_s21 = int_to_ptr.vmem [resolvable:$true] %s28_s21 }
   0x7   :  { %34 = dma.hbm_to_vmem [thread:$0]  %s27_s19, 16384, %s29_s21, [#allocation7], %s478_s22, %s478_s22, %s479_s23  }
   0x8   :  { %470 = dma.done.wait [#allocation4], 256  }
   0x9   :  { %471 = vsyncadd [#allocation4], 4294967040 }
   0xa   :  { %472 = dma.done.wait [#allocation7], 16384  }
   0xb   :  { %473 = vsyncadd [#allocation7], 4294950912  ;;  %v72_v0 = vld [vmem:[#allocation6 + $0x78] sm:$0xff]  ;;  %v71_v2 = vld [vmem:[#allocation6 + $0x70] sm:$0xff]  ;;  %s381_s27 = sshll.u32 %s516_s3, 4  ;;  %s382_s27 = int_to_ptr.hbm [resolvable:$true] %s381_s27 }
   0xc   :  { %v104_v1 = vld [vmem:[#allocation6 + $0x178] sm:$0xff]  ;;  %206 = vmatpush.msra.mxu0 %v72_v0  ;;  %v103_v4 = vld [vmem:[#allocation6 + $0x170] sm:$0xff]  ;;  %v70_v6 = vld [vmem:[#allocation6 + $0x68] sm:$0xff] }
   0xd   :  { %246 = vmatpush.msra.mxu2 %v104_v1  ;;  %v88_v3 = vld [vmem:[#allocation6 + $0xf8] sm:$0xff]  ;;  %v87_v7 = vld [vmem:[#allocation6 + $0xf0] sm:$0xff]  ;;  %v102_v8 = vld [vmem:[#allocation6 + $0x168] sm:$0xff] }
   0xe   :  { %v120_v5 = vld [vmem:[#allocation6 + $0x1f8] sm:$0xff]  ;;  %226 = vmatpush.msra.mxu1 %v88_v3  ;;  %207 = vmatpush.msra.mxu0 %v71_v2  ;;  %v119_v9 = vld [vmem:[#allocation6 + $0x1f0] sm:$0xff]  ;;  %v86_v10 = vld [vmem:[#allocation6 + $0xe8] sm:$0xff] }
   0xf   :  { %266 = vmatpush.msra.mxu3 %v120_v5  ;;  %247 = vmatpush.msra.mxu2 %v103_v4  ;;  %v69_v11 = vld [vmem:[#allocation6 + $0x60] sm:$0xff]  ;;  %v118_v13 = vld [vmem:[#allocation6 + $0x1e8] sm:$0xff]  ;;  %v68_v16 = vld [vmem:[#allocation6 + $0x58] sm:$0xff] }
  0x10   :  { %227 = vmatpush.msra.mxu1 %v87_v7  ;;  %v101_v12 = vld [vmem:[#allocation6 + $0x160] sm:$0xff]  ;;  %208 = vmatpush.msra.mxu0 %v70_v6  ;;  %v100_v17 = vld [vmem:[#allocation6 + $0x158] sm:$0xff]  ;;  %v67_v20 = vld [vmem:[#allocation6 + $0x50] sm:$0xff] }
  0x11   :  { %267 = vmatpush.msra.mxu3 %v119_v9  ;;  %248 = vmatpush.msra.mxu2 %v102_v8  ;;  %v85_v14 = vld [vmem:[#allocation6 + $0xe0] sm:$0xff]  ;;  %v84_v18 = vld [vmem:[#allocation6 + $0xd8] sm:$0xff]  ;;  %v99_v21 = vld [vmem:[#allocation6 + $0x150] sm:$0xff] }
  0x12   :  { %v117_v15 = vld [vmem:[#allocation6 + $0x1e0] sm:$0xff]  ;;  %228 = vmatpush.msra.mxu1 %v86_v10  ;;  %209 = vmatpush.msra.mxu0 %v69_v11  ;;  %v116_v19 = vld [vmem:[#allocation6 + $0x1d8] sm:$0xff]  ;;  %v83_v22 = vld [vmem:[#allocation6 + $0xd0] sm:$0xff] }
  0x13   :  { %268 = vmatpush.msra.mxu3 %v118_v13  ;;  %249 = vmatpush.msra.mxu2 %v101_v12  ;;  %v115_v23 = vld [vmem:[#allocation6 + $0x1d0] sm:$0xff]  ;;  %v66_v24 = vld [vmem:[#allocation6 + $0x48] sm:$0xff]  ;;  %v65_v28 = vld [vmem:[#allocation6 + $0x40] sm:$0xff] }
  0x14   :  { %229 = vmatpush.msra.mxu1 %v85_v14  ;;  %210 = vmatpush.msra.mxu0 %v68_v16  ;;  %v98_v25 = vld [vmem:[#allocation6 + $0x148] sm:$0xff]  ;;  %v97_v29 = vld [vmem:[#allocation6 + $0x140] sm:$0xff]  ;;  %v64_v32 = vld [vmem:[#allocation6 + $0x38] sm:$0xff] }
  0x15   :  { %269 = vmatpush.msra.mxu3 %v117_v15  ;;  %250 = vmatpush.msra.mxu2 %v100_v17  ;;  %v82_v26 = vld [vmem:[#allocation6 + $0xc8] sm:$0xff]  ;;  %v81_v30 = vld [vmem:[#allocation6 + $0xc0] sm:$0xff]  ;;  %v96_v33 = vld [vmem:[#allocation6 + $0x138] sm:$0xff] }
  0x16   :  { %230 = vmatpush.msra.mxu1 %v84_v18  ;;  %211 = vmatpush.msra.mxu0 %v67_v20  ;;  %v114_v27 = vld [vmem:[#allocation6 + $0x1c8] sm:$0xff]  ;;  %v113_v31 = vld [vmem:[#allocation6 + $0x1c0] sm:$0xff]  ;;  %v80_v34 = vld [vmem:[#allocation6 + $0xb8] sm:$0xff] }
  0x17   :  { %270 = vmatpush.msra.mxu3 %v116_v19  ;;  %251 = vmatpush.msra.mxu2 %v99_v21  ;;  %v112_v35 = vld [vmem:[#allocation6 + $0x1b8] sm:$0xff]  ;;  %v63_v36 = vld [vmem:[#allocation6 + $0x30] sm:$0xff]  ;;  %v62_v40 = vld [vmem:[#allocation6 + $0x28] sm:$0xff] }
  0x18   :  { %231 = vmatpush.msra.mxu1 %v83_v22  ;;  %212 = vmatpush.msra.mxu0 %v66_v24  ;;  %v95_v37 = vld [vmem:[#allocation6 + $0x130] sm:$0xff]  ;;  %v94_v41 = vld [vmem:[#allocation6 + $0x128] sm:$0xff]  ;;  %v61_v44 = vld [vmem:[#allocation6 + $0x20] sm:$0xff] }
  0x19   :  { %271 = vmatpush.msra.mxu3 %v115_v23  ;;  %252 = vmatpush.msra.mxu2 %v98_v25  ;;  %v79_v38 = vld [vmem:[#allocation6 + $0xb0] sm:$0xff]  ;;  %v78_v42 = vld [vmem:[#allocation6 + $0xa8] sm:$0xff]  ;;  %v93_v45 = vld [vmem:[#allocation6 + $0x120] sm:$0xff] }
  0x1a   :  { %232 = vmatpush.msra.mxu1 %v82_v26  ;;  %213 = vmatpush.msra.mxu0 %v65_v28  ;;  %v111_v39 = vld [vmem:[#allocation6 + $0x1b0] sm:$0xff]  ;;  %v110_v43 = vld [vmem:[#allocation6 + $0x1a8] sm:$0xff]  ;;  %v77_v46 = vld [vmem:[#allocation6 + $0xa0] sm:$0xff] }
  0x1b   :  { %272 = vmatpush.msra.mxu3 %v114_v27  ;;  %253 = vmatpush.msra.mxu2 %v97_v29  ;;  %v109_v47 = vld [vmem:[#allocation6 + $0x1a0] sm:$0xff]  ;;  %v60_v48 = vld [vmem:[#allocation6 + $0x18] sm:$0xff]  ;;  %v59_v52 = vld [vmem:[#allocation6 + $0x10] sm:$0xff] }
  0x1c   :  { %233 = vmatpush.msra.mxu1 %v81_v30  ;;  %214 = vmatpush.msra.mxu0 %v64_v32  ;;  %v92_v49 = vld [vmem:[#allocation6 + $0x118] sm:$0xff]  ;;  %v91_v53 = vld [vmem:[#allocation6 + $0x110] sm:$0xff]  ;;  %v58_v56 = vld [vmem:[#allocation6 + $0x8] sm:$0xff] }
  0x1d   :  { %273 = vmatpush.msra.mxu3 %v113_v31  ;;  %254 = vmatpush.msra.mxu2 %v96_v33  ;;  %v76_v50 = vld [vmem:[#allocation6 + $0x98] sm:$0xff]  ;;  %v75_v54 = vld [vmem:[#allocation6 + $0x90] sm:$0xff]  ;;  %v90_v57 = vld [vmem:[#allocation6 + $0x108] sm:$0xff] }
  0x1e   :  { %234 = vmatpush.msra.mxu1 %v80_v34  ;;  %215 = vmatpush.msra.mxu0 %v63_v36  ;;  %v108_v51 = vld [vmem:[#allocation6 + $0x198] sm:$0xff]  ;;  %v107_v55 = vld [vmem:[#allocation6 + $0x190] sm:$0xff]  ;;  %v74_v58 = vld [vmem:[#allocation6 + $0x88] sm:$0xff] }
  0x1f   :  { %274 = vmatpush.msra.mxu3 %v112_v35  ;;  %255 = vmatpush.msra.mxu2 %v95_v37  ;;  %v106_v59 = vld [vmem:[#allocation6 + $0x188] sm:$0xff]  ;;  %v57_v60 = vld [vmem:[#allocation6] sm:$0xff]  ;;  %v136_v62 = vld [vmem:[#allocation6 + $0x278] sm:$0xff] }
  0x20   :  { %235 = vmatpush.msra.mxu1 %v79_v38  ;;  %216 = vmatpush.msra.mxu0 %v62_v40  ;;  %v89_v61 = vld [vmem:[#allocation6 + $0x100] sm:$0xff]  ;;  %v168_v63 = vld [vmem:[#allocation6 + $0x378] sm:$0xff]  ;;  %v135_v2 = vld [vmem:[#allocation6 + $0x270] sm:$0xff] }
  0x21   :  { %275 = vmatpush.msra.mxu3 %v111_v39  ;;  %256 = vmatpush.msra.mxu2 %v94_v41  ;;  %v73_v0 = vld [vmem:[#allocation6 + $0x80] sm:$0xff]  ;;  %v152_v3 = vld [vmem:[#allocation6 + $0x2f8] sm:$0xff]  ;;  %v167_v4 = vld [vmem:[#allocation6 + $0x370] sm:$0xff] }
  0x22   :  { %236 = vmatpush.msra.mxu1 %v78_v42  ;;  %217 = vmatpush.msra.mxu0 %v61_v44  ;;  %v105_v1 = vld [vmem:[#allocation6 + $0x180] sm:$0xff]  ;;  %v184_v5 = vld [vmem:[#allocation6 + $0x3f8] sm:$0xff]  ;;  %v134_v6 = vld [vmem:[#allocation6 + $0x268] sm:$0xff] }
  0x23   :  { %276 = vmatpush.msra.mxu3 %v110_v43  ;;  %257 = vmatpush.msra.mxu2 %v93_v45  ;;  %v151_v7 = vld [vmem:[#allocation6 + $0x2f0] sm:$0xff]  ;;  %v166_v8 = vld [vmem:[#allocation6 + $0x368] sm:$0xff]  ;;  %v133_v10 = vld [vmem:[#allocation6 + $0x260] sm:$0xff] }
  0x24   :  { %237 = vmatpush.msra.mxu1 %v77_v46  ;;  %218 = vmatpush.msra.mxu0 %v60_v48  ;;  %v183_v9 = vld [vmem:[#allocation6 + $0x3f0] sm:$0xff]  ;;  %v150_v11 = vld [vmem:[#allocation6 + $0x2e8] sm:$0xff]  ;;  %v165_v13 = vld [vmem:[#allocation6 + $0x360] sm:$0xff] }
  0x25   :  { %277 = vmatpush.msra.mxu3 %v109_v47  ;;  %258 = vmatpush.msra.mxu2 %v92_v49  ;;  %v55_v12 = vld [vmem:[#allocation3] sm:$0xff]  ;;  %v182_v14 = vld [vmem:[#allocation6 + $0x3e8] sm:$0xff]  ;;  %v132_v15 = vld [vmem:[#allocation6 + $0x258] sm:$0xff] }
  0x26   :  { %238 = vmatpush.msra.mxu1 %v76_v50  ;;  %219 = vmatpush.msra.mxu0 %v59_v52  ;;  %187 = vst [vmem:[#allocation1] ss:$4 sm:$0xff] %v55_v12  ;;  %v149_v16 = vld [vmem:[#allocation6 + $0x2e0] sm:$0xff]  ;;  %v164_v17 = vld [vmem:[#allocation6 + $0x358] sm:$0xff]  ;;  %v131_v19 = vld [vmem:[#allocation6 + $0x250] sm:$0xff] }
  0x27   :  { %278 = vmatpush.msra.mxu3 %v108_v51  ;;  %259 = vmatpush.msra.mxu2 %v91_v53  ;;  %v181_v18 = vld [vmem:[#allocation6 + $0x3e0] sm:$0xff]  ;;  %v148_v20 = vld [vmem:[#allocation6 + $0x2d8] sm:$0xff]  ;;  %v163_v21 = vld [vmem:[#allocation6 + $0x350] sm:$0xff] }
  0x28   :  { %239 = vmatpush.msra.mxu1 %v75_v54  ;;  %220 = vmatpush.msra.mxu0 %v58_v56  ;;  %v180_v22 = vld [vmem:[#allocation6 + $0x3d8] sm:$0xff]  ;;  %v130_v23 = vld [vmem:[#allocation6 + $0x248] sm:$0xff]  ;;  %v147_v24 = vld [vmem:[#allocation6 + $0x2d0] sm:$0xff] }
  0x29   :  { %279 = vmatpush.msra.mxu3 %v107_v55  ;;  %260 = vmatpush.msra.mxu2 %v90_v57  ;;  %v162_v25 = vld [vmem:[#allocation6 + $0x348] sm:$0xff]  ;;  %v179_v26 = vld [vmem:[#allocation6 + $0x3d0] sm:$0xff]  ;;  %v56_v27 = vld [vmem:[#allocation3 + $0x8] sm:$0xff] }
  0x2a   :  { %240 = vmatpush.msra.mxu1 %v74_v58  ;;  %221 = vmatpush.msra.mxu0 %v57_v60  ;;  %v129_v28 = vld [vmem:[#allocation6 + $0x240] sm:$0xff]  ;;  %v146_v29 = vld [vmem:[#allocation6 + $0x2c8] sm:$0xff]  ;;  %v128_v32 = vld [vmem:[#allocation6 + $0x238] sm:$0xff]  ;;  %189 = vst [vmem:[#allocation1 + $0x20] ss:$4 sm:$0xff] %v56_v27 }
  0x2b   :  { %280 = vmatpush.msra.mxu3 %v106_v59  ;;  %261 = vmatpush.msra.mxu2 %v89_v61  ;;  %v161_v30 = vld [vmem:[#allocation6 + $0x340] sm:$0xff]  ;;  %v178_v31 = vld [vmem:[#allocation6 + $0x3c8] sm:$0xff]  ;;  %v160_v34 = vld [vmem:[#allocation6 + $0x338] sm:$0xff] }
  0x2c   :  { %286 = vmatpush.msrb.mxu0 %v136_v62  ;;  %241 = vmatpush.msra.mxu1 %v73_v0  ;;  %v145_v33 = vld [vmem:[#allocation6 + $0x2c0] sm:$0xff]  ;;  %v127_v36 = vld [vmem:[#allocation6 + $0x230] sm:$0xff]  ;;  %v144_v37 = vld [vmem:[#allocation6 + $0x2b8] sm:$0xff] }
  0x2d   :  { %326 = vmatpush.msrb.mxu2 %v168_v63  ;;  %281 = vmatpush.msra.mxu3 %v105_v1  ;;  %v177_v35 = vld [vmem:[#allocation6 + $0x3c0] sm:$0xff]  ;;  %v159_v38 = vld [vmem:[#allocation6 + $0x330] sm:$0xff]  ;;  %v176_v39 = vld [vmem:[#allocation6 + $0x3b8] sm:$0xff] }
  0x2e   :  { %287 = vmatpush.msrb.mxu0 %v135_v2  ;;  %306 = vmatpush.msrb.mxu1 %v152_v3  ;;  %v126_v40 = vld [vmem:[#allocation6 + $0x228] sm:$0xff]  ;;  %v143_v41 = vld [vmem:[#allocation6 + $0x2b0] sm:$0xff]  ;;  %v125_v45 = vld [vmem:[#allocation6 + $0x220] sm:$0xff] }
  0x2f   :  { %327 = vmatpush.msrb.mxu2 %v167_v4  ;;  %346 = vmatpush.msrb.mxu3 %v184_v5  ;;  %v158_v42 = vld [vmem:[#allocation6 + $0x328] sm:$0xff]  ;;  %v175_v43 = vld [vmem:[#allocation6 + $0x3b0] sm:$0xff]  ;;  %v157_v47 = vld [vmem:[#allocation6 + $0x320] sm:$0xff] }
  0x30   :  { %288 = vmatpush.msrb.mxu0 %v134_v6  ;;  %307 = vmatpush.msrb.mxu1 %v151_v7  ;;  %v192_v44 = vld.sshfl [vmem:[#allocation1 + $0x10] sm:$0xff pattern:$0x73625140]  ;;  %v142_v46 = vld [vmem:[#allocation6 + $0x2a8] sm:$0xff]  ;;  %v141_v52 = vld [vmem:[#allocation6 + $0x2a0] sm:$0xff] }
  0x31   :  { %328 = vmatpush.msrb.mxu2 %v166_v8  ;;  %347 = vmatpush.msrb.mxu3 %v183_v9  ;;  %v174_v48 = vld [vmem:[#allocation6 + $0x3a8] sm:$0xff]  ;;  %v193_v50 = vld.sshfl [vmem:[#allocation1 + $0x18] sm:$0xff pattern:$0x73625140]  ;;  %v123_v56 = vld [vmem:[#allocation6 + $0x210] sm:$0xff] }
  0x32   :  { %289 = vmatpush.msrb.mxu0 %v133_v10  ;;  %308 = vmatpush.msrb.mxu1 %v150_v11  ;;  %v190_v49 = vld.sshfl [vmem:[#allocation1] sm:$0xff pattern:$0x73625140]  ;;  %v124_v51 = vld [vmem:[#allocation6 + $0x218] sm:$0xff]  ;;  %v155_v58 = vld [vmem:[#allocation6 + $0x310] sm:$0xff] }
  0x33   :  { %329 = vmatpush.msrb.mxu2 %v165_v13  ;;  %348 = vmatpush.msrb.mxu3 %v182_v14  ;;  %v156_v53 = vld [vmem:[#allocation6 + $0x318] sm:$0xff]  ;;  %v173_v54 = vld [vmem:[#allocation6 + $0x3a0] sm:$0xff]  ;;  %v191_v55 = vld.sshfl [vmem:[#allocation1 + $0x8] sm:$0xff pattern:$0x73625140] }
  0x34   :  { %290 = vmatpush.msrb.mxu0 %v132_v15  ;;  %309 = vmatpush.msrb.mxu1 %v149_v16  ;;  %v140_v57 = vld [vmem:[#allocation6 + $0x298] sm:$0xff]  ;;  %v122_v60 = vld [vmem:[#allocation6 + $0x208] sm:$0xff]  ;;  %v139_v61 = vld [vmem:[#allocation6 + $0x290] sm:$0xff] }
  0x35   :  { %330 = vmatpush.msrb.mxu2 %v164_v17  ;;  %349 = vmatpush.msrb.mxu3 %v181_v18  ;;  %v172_v59 = vld [vmem:[#allocation6 + $0x398] sm:$0xff]  ;;  %v154_v62 = vld [vmem:[#allocation6 + $0x308] sm:$0xff]  ;;  %v171_v63 = vld [vmem:[#allocation6 + $0x390] sm:$0xff] }
  0x36   :  { %291 = vmatpush.msrb.mxu0 %v131_v19  ;;  %310 = vmatpush.msrb.mxu1 %v148_v20  ;;  %v121_v0 = vld [vmem:[#allocation6 + $0x200] sm:$0xff]  ;;  %v138_v1 = vld [vmem:[#allocation6 + $0x288] sm:$0xff]  ;;  %v196_v5 = vld.sshfl [vmem:[#allocation1 + $0x30] sm:$0xff pattern:$0x73625140] }
  0x37   :  { %331 = vmatpush.msrb.mxu2 %v163_v21  ;;  %350 = vmatpush.msrb.mxu3 %v180_v22  ;;  %v153_v2 = vld [vmem:[#allocation6 + $0x300] sm:$0xff]  ;;  %v170_v3 = vld [vmem:[#allocation6 + $0x388] sm:$0xff] }
  0x38   :  { %292 = vmatpush.msrb.mxu0 %v130_v23  ;;  %311 = vmatpush.msrb.mxu1 %v147_v24  ;;  %v194_v4 = vld.sshfl [vmem:[#allocation1 + $0x20] sm:$0xff pattern:$0x73625140]  ;;  %v195_v8 = vld.sshfl [vmem:[#allocation1 + $0x28] sm:$0xff pattern:$0x73625140] }
  0x39   :  { %332 = vmatpush.msrb.mxu2 %v162_v25  ;;  %351 = vmatpush.msrb.mxu3 %v179_v26  ;;  %v137_v6 = vld [vmem:[#allocation6 + $0x280] sm:$0xff] }
  0x3a   :  { %293 = vmatpush.msrb.mxu0 %v129_v28  ;;  %312 = vmatpush.msrb.mxu1 %v146_v29  ;;  %v169_v7 = vld [vmem:[#allocation6 + $0x380] sm:$0xff] }
  0x3b   :  { %333 = vmatpush.msrb.mxu2 %v161_v30  ;;  %352 = vmatpush.msrb.mxu3 %v178_v31  ;;  %v197_v9 = vld.sshfl [vmem:[#allocation1 + $0x38] sm:$0xff pattern:$0x73625140]  ;;  %v397_v10 = vld [vmem:[%s515_s2] ss:$0 sm:$0xff]  ;;  %s480_s2 = smov [#allocation8]  }
  0x3c   :  { %294 = vmatpush.msrb.mxu0 %v128_v32  ;;  %313 = vmatpush.msrb.mxu1 %v145_v33  ;;  %53 = vst [vmem:[#allocation2] sm:$0x3] %v397_v10  ;;  %s379_s24 = sshll.u32 %s480_s2, 4  ;;  %s380_s24 = int_to_ptr.vmem [resolvable:$true] %s379_s24 }
  0x3d   :  { %334 = vmatpush.msrb.mxu2 %v160_v34  ;;  %353 = vmatpush.msrb.mxu3 %v177_v35 }
  0x3e   :  { %295 = vmatpush.msrb.mxu0 %v127_v36  ;;  %314 = vmatpush.msrb.mxu1 %v144_v37 }
  0x3f   :  { %335 = vmatpush.msrb.mxu2 %v159_v38  ;;  %354 = vmatpush.msrb.mxu3 %v176_v39 }
  0x40   :  { %296 = vmatpush.msrb.mxu0 %v126_v40  ;;  %315 = vmatpush.msrb.mxu1 %v143_v41 }
  0x41   :  { %336 = vmatpush.msrb.mxu2 %v158_v42  ;;  %355 = vmatpush.msrb.mxu3 %v175_v43 }
  0x42   :  { %262 = vmatmul.f32.vlgmr.msra.gmra.mxu2 %v192_v44  ;;  %297 = vmatpush.msrb.mxu0 %v125_v45 }
  0x43   :  { %316 = vmatpush.msrb.mxu1 %v142_v46  ;;  %337 = vmatpush.msrb.mxu2 %v157_v47  ;;  %v54_v24 = vld [vmem:[#allocation2] sm:$0x3] }
  0x44   :  { %356 = vmatpush.msrb.mxu3 %v174_v48  ;;  %222 = vmatmul.f32.vlgmr.msra.gmra.mxu0 %v190_v49 }
  0x45   :  { %282 = vmatmul.f32.vlgmr.msra.gmra.mxu3 %v193_v50  ;;  %298 = vmatpush.msrb.mxu0 %v124_v51 }
  0x46   :  { %317 = vmatpush.msrb.mxu1 %v141_v52  ;;  %338 = vmatpush.msrb.mxu2 %v156_v53 }
  0x47   :  { %357 = vmatpush.msrb.mxu3 %v173_v54  ;;  %242 = vmatmul.f32.vlgmr.msra.gmra.mxu1 %v191_v55 }
  0x48   :  { %299 = vmatpush.msrb.mxu0 %v123_v56  ;;  %318 = vmatpush.msrb.mxu1 %v140_v57 }
  0x49   :  { %339 = vmatpush.msrb.mxu2 %v155_v58  ;;  %358 = vmatpush.msrb.mxu3 %v172_v59 }
  0x4a   :  { %300 = vmatpush.msrb.mxu0 %v122_v60  ;;  %319 = vmatpush.msrb.mxu1 %v139_v61 }
  0x4b   :  { %340 = vmatpush.msrb.mxu2 %v154_v62  ;;  %359 = vmatpush.msrb.mxu3 %v171_v63 }
  0x4c   :  { %301 = vmatpush.msrb.mxu0 %v121_v0  ;;  %320 = vmatpush.msrb.mxu1 %v138_v1 }
  0x4d   :  { %341 = vmatpush.msrb.mxu2 %v153_v2  ;;  %360 = vmatpush.msrb.mxu3 %v170_v3 }
  0x4e   :  { %302 = vmatmul.f32.vlgmr.msrb.gmra.mxu0 %v194_v4  ;;  %342 = vmatmul.f32.vlgmr.msrb.gmra.mxu2 %v196_v5 }
  0x4f   :  { %321 = vmatpush.msrb.mxu1 %v137_v6  ;;  %361 = vmatpush.msrb.mxu3 %v169_v7 }
  0x50   :  { %322 = vmatmul.f32.vlgmr.msrb.gmra.mxu1 %v195_v8  ;;  %362 = vmatmul.f32.vlgmr.msrb.gmra.mxu3 %v197_v9 }
  0xc1   :  { %v223_v11 = vpop.f32.mrf.mxu0 }
  0xc4   :  { %v243_v12 = vpop.f32.mrf.mxu1 }
  0xc5   :  { %v244_v13 = vadd.f32 %v243_v12, %v223_v11  ;;  %v263_v14 = vpop.f32.mrf.mxu2 }
  0xc7   :  { %v264_v15 = vadd.f32 %v263_v14, %v244_v13 }
  0xc8   :  { %v283_v16 = vpop.f32.mrf.mxu3 }
  0xc9   :  { %v284_v17 = vadd.f32 %v283_v16, %v264_v15 }
  0xcb   :  { %v303_v18 = vpop.f32.mrf.mxu0 }
  0xcc   :  { %v304_v19 = vadd.f32 %v303_v18, %v284_v17 }
  0xcd   :  { %v323_v20 = vpop.f32.mrf.mxu1 }
  0xce   :  { %v324_v21 = vadd.f32 %v323_v20, %v304_v19 }
  0xd1   :  { %v343_v22 = vpop.f32.mrf.mxu2 }
  0xd2   :  { %v344_v23 = vadd.f32 %v343_v22, %v324_v21 }
  0xd3   :  { %v363_v25 = vpop.f32.mrf.mxu3 }
  0xd4   :  { %v364_v26 = vadd.f32 %v363_v25, %v344_v23 }
  0xd6   :  { %v366_v27 = vadd.f32 %v364_v26, %v54_v24 }
  0xd8   :  { %367 = vst [vmem:[#allocation2] sm:$0x3] %v366_v27 }
  0xdf   :  { %v371_v28 = vld [vmem:[#allocation2] sm:$0x3] }
  0xe0   :  { %v372_v29 = vmax.f32 %v371_v28, 0.0 }
  0xe2   :  { %373 = vst [vmem:[#allocation8] sm:$0x3] %v372_v29 }
  0xe3   :  { %384 = dma.vmem_to_hbm [thread:$0]  %s380_s24, 32, %s382_s27, [#allocation5]  }
  0xe4   :  { %474 = dma.done.wait [#allocation5], 32  }
  0xe5   :  { %475 = vsyncadd [#allocation5], 4294967264 }
  0xe6   :  { %389 = vsyncpa [#allocation4], 1 }
  0xe7   :  { %390 = vsyncpa [#allocation7], 1 }
  0xe8   :  { %391 = vsyncpa [#allocation5], 1 }

</bundles_post_ra>
